<compile_context>
chip_gen: v7x
topology: tpu7x:2x2x1
jax: 0.10.0
libtpu: 0.0.40
codegen_flags: <defaults>
</compile_context>

<pallas_src>
import jax
import jax.numpy as jnp
from jax.experimental import pallas as pl
from jax.experimental.pallas import tpu as pltpu


# ----------------------------------------------------------------------------- kernel
def linear_kernel(x_ref, w_ref, b_ref, o_ref, acc_ref):
    """Grid step (i, j, k): accumulate x_tile @ w_tile into f32 VMEM, finalize with bias."""
    k = pl.program_id(2)
    nk = pl.num_programs(2)

    prod = jnp.dot(x_ref[...], w_ref[...], preferred_element_type=jnp.float32)

    @pl.when(k == 0)
    def _first():
        acc_ref[...] = prod          # direct assign: skip zero-fill + extra acc read

    @pl.when(k != 0)
    def _accumulate():
        acc_ref[...] += prod

    @pl.when(k == nk - 1)
    def _finalize():
        o_ref[...] = (acc_ref[...] + b_ref[...]).astype(o_ref.dtype)


# ----------------------------------------------------------------------- tiling helpers
def _round_up(a: int, b: int) -> int:
    return ((a + b - 1) // b) * b


def _pick_tile(dim: int, cap: int, align: int) -> int:
    """Largest aligned tile <= cap; prefer a divisor of the aligned dim to avoid padding."""
    d = _round_up(dim, align)
    if d <= cap:
        return d
    cap = max(align, (cap // align) * align)
    if d % cap == 0:
        return cap
    t = cap - align
    while t >= max(align, cap // 2):
        if d % t == 0:
            return t
        t -= align
    return cap


def _hw_caps():
    """Per-generation (tm_cap, tn_cap, tk_cap, vmem_limit_bytes)."""
    try:
        kind = jax.devices()[0].device_kind.lower()
    except Exception:  # pragma: no cover - defensive
        kind = ""
    if "v7" in kind:
        # 64 MiB VMEM/TC, 3.2 TB/s HBM: ~768 tiles already compute-bound; keep VMEM headroom.
        return 768, 768, 512, 48 * 1024 * 1024
    if "v6" in kind or "trillium" in kind:
        # 128 MiB VMEM, 1.35 TB/s HBM: needs ~1024 tiles to reach compute-bound on bf16.
        return 1024, 1024, 512, 100 * 1024 * 1024
    if "v5" in kind:
        # 197 TF/s / 0.82 TB/s: 512 tiles suffice; raise scoped VMEM above the 16 MiB default.
        return 512, 512, 512, 64 * 1024 * 1024
    return 512, 512, 512, 64 * 1024 * 1024


# ------------------------------------------------------------------------------ wrapper
def noisy_linear(x, w, b, *, training=False, noise_stddev=0.1, key=None,
                 compute_dtype=None):
    """Equivalent of NoisyLinear.forward: (x [+ noise]) @ w + b."""
    M, K = x.shape
    K2, N = w.shape
    assert K == K2, "x / w inner-dimension mismatch"
    out_dtype = x.dtype

    if training:
        if key is None:
            raise ValueError("training=True requires an explicit PRNG `key`")
        # Noise matches torch.normal(0, stddev, x.shape) distributionally (not bit-identical
        # to PyTorch's RNG). Added once in f32 here instead of streaming a second (M, K)
        # array through the kernel, which would double LHS HBM traffic (re-fetched per j).
        noise = noise_stddev * jax.random.normal(key, x.shape, dtype=jnp.float32)
        x = (x.astype(jnp.float32) + noise).astype(out_dtype)

    if compute_dtype is not None:
        # Feed the MXU narrow operands (e.g. bf16); accumulation stays f32 in VMEM.
        x = x.astype(compute_dtype)
        w = w.astype(compute_dtype)

    cap_m, cap_n, cap_k, vmem_limit = _hw_caps()
    tm = min(cap_m, _round_up(M, 8))
    tn = _pick_tile(N, cap_n, 128)
    tk = _pick_tile(K, cap_k, 128)
    Mp, Np, Kp = _round_up(M, tm), _round_up(N, tn), _round_up(K, tk)

    # Pad only when actually unaligned (zero rows/cols contribute nothing to the matmul).
    x_p = jnp.pad(x, ((0, Mp - M), (0, Kp - K))) if (Mp, Kp) != (M, K) else x
    w_p = jnp.pad(w, ((0, Kp - K), (0, Np - N))) if (Kp, Np) != (K, N) else w
    b_p = (jnp.pad(b, (0, Np - N)) if Np != N else b).reshape(1, Np).astype(jnp.float32)

    grid = (Mp // tm, Np // tn, Kp // tk)

    in_specs = [
        pl.BlockSpec((tm, tk), lambda i, j, k: (i, k)),   # x
        pl.BlockSpec((tk, tn), lambda i, j, k: (k, j)),   # w
        pl.BlockSpec((1, tn), lambda i, j, k: (0, j)),    # bias (f32)
    ]
    o_spec = pl.BlockSpec((tm, tn), lambda i, j, k: (i, j))

    itemsize = lambda a: jnp.dtype(a.dtype).itemsize
    cost = pl.CostEstimate(
        flops=2 * Mp * Np * Kp,
        bytes_accessed=int(x_p.size * itemsize(x_p) * (Np // tn)
                           + w_p.size * itemsize(w_p) * (Mp // tm)
                           + Mp * Np * jnp.dtype(out_dtype).itemsize
                           + b_p.size * 4),
        transcendentals=0,
    )

    out_p = pl.pallas_call(
        linear_kernel,
        out_shape=jax.ShapeDtypeStruct((Mp, Np), out_dtype),
        grid_spec=pltpu.PrefetchScalarGridSpec(
            num_scalar_prefetch=0,
            grid=grid,
            in_specs=in_specs,
            out_specs=o_spec,
            scratch_shapes=[pltpu.VMEM((tm, tn), jnp.float32)],
        ),
        compiler_params=pltpu.CompilerParams(
            dimension_semantics=("parallel", "parallel", "arbitrary"),
            vmem_limit_bytes=vmem_limit,
        ),
        cost_estimate=cost,
    )(x_p, w_p, b_p)

    if (Mp, Np) != (M, N):
        out_p = out_p[:M, :N]
    return out_p


def init_params(key, input_size, output_size):
    """Deterministic xavier_uniform for w (shape (input_size, output_size)), zeros for b."""
    bound = (6.0 / (input_size + output_size)) ** 0.5
    w = jax.random.uniform(key, (input_size, output_size),
                           minval=-bound, maxval=bound, dtype=jnp.float32)
    b = jnp.zeros((output_size,), dtype=jnp.float32)
    return w, b


if __name__ == "__main__":
    key = jax.random.PRNGKey(0)
    k_w, k_x, k_noise = jax.random.split(key, 3)

    batch, input_size, output_size = 8, 32, 16
    w, b = init_params(k_w, input_size, output_size)
    x = jax.random.normal(k_x, (batch, input_size), dtype=jnp.float32)

    # Eval path, f32 operands: exact semantics of torch.mm(x, w) + b.
    out = jax.block_until_ready(noisy_linear(x, w, b, training=False))
    ref = x @ w + b[None, :]
    assert out.shape == (batch, output_size)
    assert jnp.allclose(out, ref, atol=1e-5, rtol=1e-5), "eval-path mismatch vs reference"

    # Training path: Gaussian input noise (pre-added once in f32 in the wrapper).
    noise = 0.1 * jax.random.normal(k_noise, x.shape, dtype=jnp.float32)
    out_train = jax.block_until_ready(
        noisy_linear(x, w, b, training=True, noise_stddev=0.1, key=k_noise))
    ref_train = (x + noise) @ w + b[None, :]
    assert out_train.shape == (batch, output_size)
    assert jnp.allclose(out_train, ref_train, atol=1e-5, rtol=1e-5), "train-path mismatch"

    # bf16-fed MXU path (recommended perf config on v5e/v6e/v7x), f32 accumulation.
    out_bf16 = jax.block_until_ready(noisy_linear(x, w, b, compute_dtype=jnp.bfloat16))
    assert jnp.allclose(out_bf16.astype(jnp.float32), ref, atol=5e-2, rtol=5e-2), \
        "bf16 compute path mismatch"

    print("KERNEL_OK")
</pallas_src>

<mosaic_0001>
module attributes {stable_mosaic.version = 11 : i64} {
  func.func @linear_kernel(%arg0: i32, %arg1: i32, %arg2: i32, %arg3: memref<8x128xf32, #tpu.memory_space<vmem>>, %arg4: memref<128x128xf32, #tpu.memory_space<vmem>>, %arg5: memref<1x128xf32, #tpu.memory_space<vmem>>, %arg6: memref<8x128xf32, #tpu.memory_space<vmem>>, %arg7: memref<8x128xf32, #tpu.memory_space<vmem>>) attributes {dimension_semantics = [#tpu.dimension_semantics<parallel>, #tpu.dimension_semantics<parallel>, #tpu.dimension_semantics<arbitrary>], iteration_bounds = array<i64: 1, 1, 1>, scalar_prefetch = 0 : i64, scratch_operands = 1 : i64, tpu.core_type = #tpu.core_type<tc>, window_params = [{transform_indices = @transform_0, window_bounds = array<i64: 8, 128>}, {transform_indices = @transform_1, window_bounds = array<i64: 128, 128>}, {transform_indices = @transform_2, window_bounds = array<i64: 1, 128>}, {transform_indices = @transform_3, window_bounds = array<i64: 8, 128>}]} {
    %c0 = arith.constant 0 : index
    %c0_0 = arith.constant 0 : index
    %0 = vector.load %arg3[%c0, %c0_0] : memref<8x128xf32, #tpu.memory_space<vmem>>, vector<8x128xf32>
    %c0_1 = arith.constant 0 : index
    %c0_2 = arith.constant 0 : index
    %1 = vector.load %arg4[%c0_1, %c0_2] : memref<128x128xf32, #tpu.memory_space<vmem>>, vector<128x128xf32>
    %cst = arith.constant dense<0.000000e+00> : vector<8x128xf32>
    %2 = tpu.matmul %0, %1, %cst {dimension_numbers = #tpu.dot_dimension_numbers<[1], [0], [0], [1], [0, 0, 1, 1], [], []>} : vector<8x128xf32>, vector<128x128xf32>, vector<8x128xf32> -> vector<8x128xf32>
    %c0_i32 = arith.constant 0 : i32
    %3 = arith.cmpi eq, %arg2, %c0_i32 : i32
    %4 = arith.extui %3 : i1 to i32
    %c0_i32_3 = arith.constant 0 : i32
    %5 = arith.cmpi ne, %4, %c0_i32_3 : i32
    scf.if %5 {
      %c0_8 = arith.constant 0 : index
      %c0_9 = arith.constant 0 : index
      %12 = vector.load %arg7[%c0_8, %c0_9] : memref<8x128xf32, #tpu.memory_space<vmem>>, vector<8x128xf32>
      tpu.vector_store %arg7[%c0_8, %c0_9], %2 {strides = array<i32>} : memref<8x128xf32, #tpu.memory_space<vmem>>, vector<8x128xf32>,
    } else {
    }
    %c0_i32_4 = arith.constant 0 : i32
    %6 = arith.cmpi ne, %arg2, %c0_i32_4 : i32
    %7 = arith.extui %6 : i1 to i32
    %c0_i32_5 = arith.constant 0 : i32
    %8 = arith.cmpi ne, %7, %c0_i32_5 : i32
    scf.if %8 {
      %c0_8 = arith.constant 0 : index
      %c0_9 = arith.constant 0 : index
      %12 = vector.load %arg7[%c0_8, %c0_9] : memref<8x128xf32, #tpu.memory_space<vmem>>, vector<8x128xf32>
      %13 = arith.addf %12, %2 : vector<8x128xf32>
      %c0_10 = arith.constant 0 : index
      %c0_11 = arith.constant 0 : index
      %14 = vector.load %arg7[%c0_10, %c0_11] : memref<8x128xf32, #tpu.memory_space<vmem>>, vector<8x128xf32>
      tpu.vector_store %arg7[%c0_10, %c0_11], %13 {strides = array<i32>} : memref<8x128xf32, #tpu.memory_space<vmem>>, vector<8x128xf32>,
    } else {
    }
    %c0_i32_6 = arith.constant 0 : i32
    %9 = arith.cmpi eq, %arg2, %c0_i32_6 : i32
    %10 = arith.extui %9 : i1 to i32
    %c0_i32_7 = arith.constant 0 : i32
    %11 = arith.cmpi ne, %10, %c0_i32_7 : i32
    scf.if %11 {
      %c0_8 = arith.constant 0 : index
      %c0_9 = arith.constant 0 : index
      %12 = vector.load %arg7[%c0_8, %c0_9] : memref<8x128xf32, #tpu.memory_space<vmem>>, vector<8x128xf32>
      %c0_10 = arith.constant 0 : index
      %c0_11 = arith.constant 0 : index
      %13 = vector.load %arg5[%c0_10, %c0_11] : memref<1x128xf32, #tpu.memory_space<vmem>>, vector<1x128xf32>
      %14 = vector.broadcast %13 : vector<1x128xf32> to vector<8x128xf32>
      %15 = arith.addf %12, %14 : vector<8x128xf32>
      %c0_12 = arith.constant 0 : index
      %c0_13 = arith.constant 0 : index
      %16 = vector.load %arg6[%c0_12, %c0_13] : memref<8x128xf32, #tpu.memory_space<vmem>>, vector<8x128xf32>
      tpu.vector_store %arg6[%c0_12, %c0_13], %15 {strides = array<i32>} : memref<8x128xf32, #tpu.memory_space<vmem>>, vector<8x128xf32>,
    } else {
    }
    return
  }
  func.func @transform_0(%arg0: i32, %arg1: i32, %arg2: i32) -> (i32, i32) {
    %c0_i32 = arith.constant 0 : i32
    return %arg0, %arg2 : i32, i32
  }
  func.func @transform_1(%arg0: i32, %arg1: i32, %arg2: i32) -> (i32, i32) {
    %c0_i32 = arith.constant 0 : i32
    return %arg2, %arg1 : i32, i32
  }
  func.func @transform_2(%arg0: i32, %arg1: i32, %arg2: i32) -> (i32, i32) {
    %c0_i32 = arith.constant 0 : i32
    %c0_i32_0 = arith.constant 0 : i32
    return %c0_i32, %arg1 : i32, i32
  }
  func.func @transform_3(%arg0: i32, %arg1: i32, %arg2: i32) -> (i32, i32) {
    %c0_i32 = arith.constant 0 : i32
    return %arg0, %arg1 : i32, i32
  }
}

</mosaic_0001>

<bundles_post_ra>
// kernel: tpu_custom_call.1
= control target key start
LH: loop header
LB: loop body
LE: loop exit
PB: predicated region body
PF: predicated region fallthrough
CT: control target
= control target key end

     0   :  { %8 = vsyncpa [#allocation4], 0  ;;  %s437_s0 = inlined_call_operand.hbm [shape: f32[8,128], index: 0, kind: input, shape index: {}]   ;;  %s438_s1 = inlined_call_operand.hbm [shape: f32[128,128], index: 1, kind: input, shape index: {}]   ;;  %s439_s2 = inlined_call_operand.hbm [shape: f32[1,128], index: 2, kind: input, shape index: {}]   ;;  %s440_s3 = inlined_call_operand.hbm [shape: f32[8,128], index: 3, kind: output, shape index: {}]  }
   0x1   :  { %9 = vsyncpa [#allocation7], 0 }
   0x2   :  { %10 = vsyncpa [#allocation5], 0  ;;  %s360_s12 = smov [#allocation6]   ;;  %s266_s16 = scalar_lea.hbm %s438_s1, 2048 }
   0x3   :  { %s26_s13 = sshll.u32 %s360_s12, 4  ;;  %p267_p0 = scmp.ne.s32.totalorder %s438_s1, %s266_s16  ;;  %s27_s13 = int_to_ptr.vmem [resolvable:$true] %s26_s13 }
   0x4   :  { %p270_p1 = scmp.lt.u32.totalorder %s266_s16, %s438_s1 }
   0x6   :  { %p272_p2 = pnand %p270_p1, %p267_p0 }
   0x8   :  { %275 = shalt.err (!%p272_p2)
}
   0x9   :  { %s276_s21 = scalar_lea.vmem %s27_s13, 2048  ;;  %p281_p4 = scmp.lt.s32.totalorder %s27_s13, %s27_s13 }
   0xa   :  { %p277_p3 = scmp.ne.s32.totalorder %s27_s13, %s276_s21  ;;  %p282_p5 = scmp.lt.s32.totalorder %s276_s21, %s276_s21 }
   0xc   :  { %p283_p6 = por %p282_p5, %p281_p4 }
   0xe   :  { %p284_p7 = pnand %p283_p6, %p277_p3 }
  0x10   :  { %287 = shalt.err (!%p284_p7)
}
  0x11   :  { %s361_s22 = smov 128   ;;  %s362_s23 = smov 8  }
  0x12   :  { %32 = dma.hbm_to_vmem [thread:$0]  %s438_s1, 2048, %s27_s13, [#allocation7], %s361_s22, %s361_s22, %s362_s23  }
  0x13   :  { %s363_s26 = smov [#allocation3]   ;;  %s364_s28 = smov [#allocation8]  }
  0x14   :  { %s17_s27 = sshll.u32 %s363_s26, 4  ;;  %s39_s29 = sshll.u32 %s364_s28, 4  ;;  %s18_s27 = int_to_ptr.vmem [resolvable:$true] %s17_s27  ;;  %s40_s29 = int_to_ptr.vmem [resolvable:$true] %s39_s29 }
  0x15   :  { %s288_s5 = scalar_lea.hbm %s437_s0, 128 }
  0x16   :  { %p289_p8 = scmp.ne.s32.totalorder %s437_s0, %s288_s5  ;;  %p292_p9 = scmp.lt.u32.totalorder %s288_s5, %s437_s0 }
  0x18   :  { %p294_p10 = pnand %p292_p9, %p289_p8 }
  0x1a   :  { %297 = shalt.err (!%p294_p10)
}
  0x1b   :  { %s298_s1 = scalar_lea.vmem %s18_s27, 128  ;;  %p303_p12 = scmp.lt.s32.totalorder %s18_s27, %s18_s27 }
  0x1c   :  { %p299_p11 = scmp.ne.s32.totalorder %s18_s27, %s298_s1  ;;  %p304_p13 = scmp.lt.s32.totalorder %s298_s1, %s298_s1 }
  0x1e   :  { %p305_p0 = por %p304_p13, %p303_p12 }
  0x20   :  { %p306_p1 = pnand %p305_p0, %p299_p11 }
  0x22   :  { %309 = shalt.err (!%p306_p1)
}
  0x23   :  { %20 = dma.hbm_to_vmem [thread:$0]  %s437_s0, 128, %s18_s27, [#allocation4]  }
  0x24   :  { %s310_s14 = scalar_lea.hbm %s439_s2, 16 }
  0x25   :  { %p311_p2 = scmp.ne.s32.totalorder %s439_s2, %s310_s14  ;;  %p314_p3 = scmp.lt.u32.totalorder %s310_s14, %s439_s2 }
  0x27   :  { %p316_p4 = pnand %p314_p3, %p311_p2 }
  0x29   :  { %319 = shalt.err (!%p316_p4)
}
  0x2a   :  { %s320_s19 = scalar_lea.vmem %s40_s29, 16  ;;  %s324_s20 = scalar_lea.vmem %s40_s29, 32 }
  0x2b   :  { %p321_p5 = scmp.ne.s32.totalorder %s40_s29, %s320_s19  ;;  %p325_p6 = scmp.lt.s32.totalorder %s40_s29, %s40_s29 }
  0x2c   :  { %p326_p7 = scmp.lt.s32.totalorder %s324_s20, %s320_s19 }
  0x2e   :  { %p327_p8 = por %p326_p7, %p325_p6 }
  0x30   :  { %p328_p9 = pnand %p327_p8, %p321_p5 }
  0x32   :  { %331 = shalt.err (!%p328_p9)
}
  0x33   :  { %42 = dma.hbm_to_vmem [thread:$0]  %s439_s2, 16, %s40_s29, [#allocation7]  }
  0x34   :  { %354 = dma.done.wait [#allocation4], 128  }
  0x35   :  { %355 = vsyncadd [#allocation4], 4294967168 }
  0x36   :  { %356 = dma.done.wait [#allocation7], 2064  }
  0x37   :  { %357 = vsyncadd [#allocation7], 4294965232  ;;  %v365_v0 = vmov 0.0|0.0   ;;  %vm366_vm0 = vmmov 0   ;;  %v367_v1 = vmov 0.0   ;;  %v53_v2 = vld [vmem:[#allocation6] sm:$0xff] }
  0x38   :  { %233 = vmatprep.subr.bf16.mxu0 %v365_v0  ;;  %230 = vmatprep.mubr.msk.f32.mxu0 %vm366_vm0, %v367_v1  ;;  %v54_v3 = vld [vmem:[#allocation6 + $0x8] sm:$0xff]  ;;  %v55_v4 = vld [vmem:[#allocation6 + $0x10] sm:$0xff]  ;;  %v56_v6 = vld [vmem:[#allocation6 + $0x18] sm:$0xff]  ;;  %s368_s2 = smov [#allocation9]  }
  0x39   :  { %v234_v5 = vpack.c.bf16 %v54_v3, %v53_v2  ;;  %v237_v7 = vpack.c.bf16 %v56_v6, %v55_v4  ;;  %v57_v8 = vld [vmem:[#allocation6 + $0x20] sm:$0xff]  ;;  %v58_v9 = vld [vmem:[#allocation6 + $0x28] sm:$0xff]  ;;  %v59_v11 = vld [vmem:[#allocation6 + $0x30] sm:$0xff]  ;;  %s170_s22 = sshll.u32 %s368_s2, 4  ;;  %s171_s22 = int_to_ptr.vmem [resolvable:$true] %s170_s22 }
  0x3a   :  { %v240_v10 = vpack.c.bf16 %v58_v9, %v57_v8  ;;  %v60_v12 = vld [vmem:[#allocation6 + $0x38] sm:$0xff]  ;;  %v61_v14 = vld [vmem:[#allocation6 + $0x40] sm:$0xff]  ;;  %v62_v15 = vld [vmem:[#allocation6 + $0x48] sm:$0xff]  ;;  %s332_s23 = scalar_lea.vmem %s171_s22, 128  ;;  %p337_p11 = scmp.lt.s32.totalorder %s171_s22, %s171_s22 }
  0x3b   :  { %235 = vmatpush3.bf16.msra.mxu0 %v234_v5  ;;  %v243_v13 = vpack.c.bf16 %v60_v12, %v59_v11  ;;  %v246_v16 = vpack.c.bf16 %v62_v15, %v61_v14  ;;  %v63_v17 = vld [vmem:[#allocation6 + $0x50] sm:$0xff]  ;;  %v64_v18 = vld [vmem:[#allocation6 + $0x58] sm:$0xff]  ;;  %v65_v20 = vld [vmem:[#allocation6 + $0x60] sm:$0xff]  ;;  %p333_p10 = scmp.ne.s32.totalorder %s171_s22, %s332_s23  ;;  %p338_p12 = scmp.lt.s32.totalorder %s332_s23, %s332_s23 }
  0x3c   :  { %236 = vmatprep.subr.bf16.mxu0 %v365_v0  ;;  %v249_v19 = vpack.c.bf16 %v64_v18, %v63_v17  ;;  %v66_v21 = vld [vmem:[#allocation6 + $0x68] sm:$0xff]  ;;  %v67_v23 = vld [vmem:[#allocation6 + $0x70] sm:$0xff]  ;;  %v68_v24 = vld [vmem:[#allocation6 + $0x78] sm:$0xff] }
  0x3d   :  { %v252_v22 = vpack.c.bf16 %v66_v21, %v65_v20  ;;  %v255_v25 = vpack.c.bf16 %v68_v24, %v67_v23  ;;  %v52_v26 = vld [vmem:[#allocation3] sm:$0xff]  ;;  %v180_v27 = vld [vmem:[#allocation8] ss:$0 sm:$0xff]  ;;  %p339_p13 = por %p338_p12, %p337_p11 }
  0x3f   :  { %238 = vmatpush3.bf16.msra.mxu0 %v237_v7  ;;  %p340_p0 = pnand %p339_p13, %p333_p10 }
  0x40   :  { %239 = vmatprep.subr.bf16.mxu0 %v365_v0 }
  0x43   :  { %241 = vmatpush3.bf16.msra.mxu0 %v240_v10 }
  0x44   :  { %242 = vmatprep.subr.bf16.mxu0 %v365_v0 }
  0x47   :  { %244 = vmatpush3.bf16.msra.mxu0 %v243_v13 }
  0x48   :  { %245 = vmatprep.subr.bf16.mxu0 %v365_v0 }
  0x4b   :  { %247 = vmatpush3.bf16.msra.mxu0 %v246_v16 }
  0x4c   :  { %248 = vmatprep.subr.bf16.mxu0 %v365_v0 }
  0x4f   :  { %250 = vmatpush3.bf16.msra.mxu0 %v249_v19 }
  0x50   :  { %251 = vmatprep.subr.bf16.mxu0 %v365_v0 }
  0x53   :  { %253 = vmatpush3.bf16.msra.mxu0 %v252_v22 }
  0x54   :  { %254 = vmatprep.subr.bf16.mxu0 %v365_v0 }
  0x57   :  { %256 = vmatpush3.bf16.msra.mxu0 %v255_v25 }
  0x5a   :  { %231 = vmatmul.mubr.f32.vlgmr.msra.gmra.mrb[0].mxu0 %v52_v26 }
 0x12d   :  { %v135_v28 = vpop.f32.mrb[0].mxu0 }
 0x12e   :  { %v162_v29 = vadd.f32 %v180_v27, %v135_v28  ;;  %v232_v30 = vpop.f32.mrb[1].mxu0 }
 0x130   :  { %163 = vst [vmem:[#allocation9] sm:$0xff] %v162_v29 }
 0x131   :  { %343 = shalt.err (!%p340_p0)
}
 0x132   :  { %s344_s26 = scalar_lea.hbm %s440_s3, 128 }
 0x133   :  { %p345_p1 = scmp.ne.s32.totalorder %s440_s3, %s344_s26  ;;  %p348_p2 = scmp.lt.u32.totalorder %s344_s26, %s440_s3 }
 0x135   :  { %p350_p3 = pnand %p348_p2, %p345_p1 }
 0x137   :  { %353 = shalt.err (!%p350_p3)
}
 0x138   :  { %173 = dma.vmem_to_hbm [thread:$0]  %s171_s22, 128, %s440_s3, [#allocation5]  }
 0x139   :  { %358 = dma.done.wait [#allocation5], 128  }
 0x13a   :  { %359 = vsyncadd [#allocation5], 4294967168 }
 0x13b   :  { %177 = vsyncpa [#allocation4], 1 }
 0x13c   :  { %178 = vsyncpa [#allocation7], 1 }
 0x13d   :  { %179 = vsyncpa [#allocation5], 1 }

</bundles_post_ra>
